<compile_context>
chip_gen: v5e
topology: v5e:2x2
jax: 0.10.0
libtpu: 0.0.40
codegen_flags: <defaults>
</compile_context>

<pallas_src>
import jax
import jax.numpy as jnp
from jax.experimental import pallas as pl
from jax.experimental.pallas import tpu as pltpu


def _conv1x1_kernel(x_ref, w_ref, b_ref, o_ref):
    """Per-tile 1x1 conv (channel mix) + bias on a lane/sublane-dense layout.

    x_ref / o_ref : (N*C, TILE_R, 128) in VMEM.  Row n*C + i holds TILE_R*128
                    spatial elements of (batch n, channel i) -> every slice is
                    a dense (TILE_R, 128) slab (full (8,128) vregs when
                    TILE_R is a multiple of 8).
    w_ref         : (C, C) in SMEM, w[i, o] mixes in-channel i -> out-channel o.
    b_ref         : (C,)   in SMEM.

    out[n*C + o] = sum_i w[i, o] * x[n*C + i] + b[o]

    C is tiny, so this is ~2*C VPU FMAs per dense output slab; each output is
    written with a single dense store (no masked vst).
    """
    c = w_ref.shape[0]
    n = x_ref.shape[0] // c
    for b in range(n):
        # Read each input-channel slice once (free Ref view + one VMEM load),
        # upcast per-slice, reuse across all C output channels.
        xs = [x_ref[b * c + i].astype(jnp.float32) for i in range(c)]
        for o in range(c):
            acc = w_ref[0, o] * xs[0]
            for i in range(1, c):
                acc = acc + w_ref[i, o] * xs[i]
            # Single dense (TILE_R, 128) store per output channel row.
            o_ref[b * c + o] = (acc + b_ref[o]).astype(o_ref.dtype)


def _choose_tile_r(nc, r, itemsize, vmem_budget_bytes=8 << 20, min_grid_steps=4):
    """Pick the sublane-row tile (second-to-last block dim).

    Constraints:
      * multiple of 8 (dense (8,128) vregs, unmasked stores), or == r (legal
        full-dim block when r < 8);
      * pipelined working set (in + out, double-buffered) <= vmem_budget_bytes,
        which is safe on every generation's scoped VMEM default;
      * keep >= min_grid_steps grid steps when r allows it, so v7x's 2
        TensorCores each get >= 2 pipelined steps on the "parallel" axis.
    """
    if r < 8:
        return r  # block second-to-last dim equals the full array dim -> legal
    max_r = vmem_budget_bytes // (4 * nc * 128 * itemsize)  # 2 streams x 2 bufs
    max_r = max(8, (max_r // 8) * 8)
    target = (r // min_grid_steps // 8) * 8
    if target >= 8:
        max_r = min(max_r, target)
    return min(r, max_r)


def conv1x1_pallas(x_nchw, weight, bias, *, tile_r=None):
    """The wrapped `fn`: 1x1 conv (channel mixing) + bias, NCHW in / NCHW out."""
    n, c, h, w = x_nchw.shape
    f = h * w
    x2d = x_nchw.reshape(n * c, f)               # pure reshape, no transpose

    # Keep the lane axis dense: pad F up to a multiple of 128 if needed.
    pad = (-f) % 128
    if pad:
        x2d = jnp.pad(x2d, ((0, 0), (0, pad)))
    r = (f + pad) // 128
    x3d = x2d.reshape(n * c, r, 128)             # (rows, sublane-rows, lanes)

    if tile_r is None:
        tile_r = _choose_tile_r(n * c, r, x3d.dtype.itemsize)
    grid = (pl.cdiv(r, tile_r),)

    out3d = pl.pallas_call(
        _conv1x1_kernel,
        out_shape=jax.ShapeDtypeStruct((n * c, r, 128), x3d.dtype),
        grid=grid,
        in_specs=[
            pl.BlockSpec((n * c, tile_r, 128), lambda j: (0, j, 0)),
            pl.BlockSpec(memory_space=pltpu.MemorySpace.SMEM),   # weight (C, C)
            pl.BlockSpec(memory_space=pltpu.MemorySpace.SMEM),   # bias (C,)
        ],
        out_specs=pl.BlockSpec((n * c, tile_r, 128), lambda j: (0, j, 0)),
        compiler_params=pltpu.CompilerParams(
            dimension_semantics=("parallel",),   # independent spatial tiles
        ),
    )(x3d, weight, bias)

    out2d = out3d.reshape(n * c, r * 128)
    if pad:
        out2d = out2d[:, :f]
    return out2d.reshape(n, c, h, w)


def random_apply_forward(x_nchw, weight, bias, p, key):
    """RandomApply.forward: with prob (1-p) return x, with prob p return fn(x).

    The coin flip is a host-level draw (same as `random.random()` in the
    PyTorch module), so the identity branch returns x itself -- no kernel
    launch, no HBM round trip, no lax.cond pass-through copy.
    """
    u = float(jax.random.uniform(key, ()))
    if u > p:
        return x_nchw
    return conv1x1_pallas(x_nchw, weight, bias)


if __name__ == "__main__":
    key = jax.random.PRNGKey(0)
    k_x, k_w, k_b, k_coin, k_x2, k_x3 = jax.random.split(key, 6)

    N, C, H, W = 2, 4, 16, 16
    x = jax.random.normal(k_x, (N, C, H, W), dtype=jnp.float32)
    weight = jax.random.normal(k_w, (C, C), dtype=jnp.float32) * 0.1
    bias = jax.random.normal(k_b, (C,), dtype=jnp.float32) * 0.01
    p = 0.5

    # Pure-JAX reference for fn: out[n,o,h,w] = sum_i w[i,o]*x[n,i,h,w] + b[o]
    def ref_fn(xx):
        return jnp.einsum("io,nihw->nohw", weight, xx) + bias[None, :, None, None]

    # 1) fn branch through the Pallas kernel (small spec shape -> single tile).
    out_applied = jax.block_until_ready(conv1x1_pallas(x, weight, bias))
    assert jnp.allclose(out_applied, ref_fn(x), atol=1e-4), "fn branch mismatch"

    # 2) Larger spatial extent -> multi-step grid (validates index_map / tiling
    #    and the >=4-grid-steps rule used for v7x TC sharding).
    x_big = jax.random.normal(k_x2, (N, C, 64, 64), dtype=jnp.float32)
    out_big = jax.block_until_ready(conv1x1_pallas(x_big, weight, bias))
    assert jnp.allclose(out_big, ref_fn(x_big), atol=1e-4), "tiled fn mismatch"

    # 3) H*W not a multiple of 128 -> padded lane-axis path.
    x_rag = jax.random.normal(k_x3, (N, C, 10, 10), dtype=jnp.float32)
    out_rag = jax.block_until_ready(conv1x1_pallas(x_rag, weight, bias))
    assert jnp.allclose(out_rag, ref_fn(x_rag), atol=1e-4), "ragged-F mismatch"

    # 4) RandomApply forward: force both branches deterministically.
    out_id = random_apply_forward(x, weight, bias, p=-1.0, key=k_coin)  # u > -1 always
    assert out_id is x, "identity branch should return x itself (no copy)"
    out_fn = jax.block_until_ready(
        random_apply_forward(x, weight, bias, p=2.0, key=k_coin))        # u > 2 never
    assert jnp.allclose(out_fn, ref_fn(x), atol=1e-4), "applied branch mismatch"

    # 5) The actual coin-flip forward at p=0.5.
    out = jax.block_until_ready(random_apply_forward(x, weight, bias, p, k_coin))
    u = float(jax.random.uniform(k_coin, ()))
    expected = x if u > p else ref_fn(x)
    assert out.shape == x.shape and out.dtype == x.dtype
    assert jnp.allclose(out, expected, atol=1e-4), "RandomApply branch mismatch"

    print("KERNEL_OK")
</pallas_src>

<mosaic_0001>
module attributes {stable_mosaic.version = 11 : i64} {
  func.func @_conv1x1_kernel(%arg0: i32, %arg1: memref<8x2x128xf32, #tpu.memory_space<vmem>>, %arg2: memref<4x4xf32, #tpu.memory_space<smem>>, %arg3: memref<4xf32, #tpu.memory_space<smem>>, %arg4: memref<8x2x128xf32, #tpu.memory_space<vmem>>) attributes {dimension_semantics = [#tpu.dimension_semantics<parallel>], iteration_bounds = array<i64: 1>, scalar_prefetch = 0 : i64, scratch_operands = 0 : i64, tpu.core_type = #tpu.core_type<tc>, window_params = [{transform_indices = @transform_0, window_bounds = array<i64: 8, 2, 128>}, {transform_indices = @transform_1, window_bounds = array<i64: 4, 4>}, {transform_indices = @transform_2, window_bounds = array<i64: 4>}, {transform_indices = @transform_3, window_bounds = array<i64: 8, 2, 128>}]} {
    %c0 = arith.constant 0 : index
    %c0_0 = arith.constant 0 : index
    %c0_1 = arith.constant 0 : index
    %0 = vector.load %arg1[%c0, %c0_0, %c0_1] : memref<8x2x128xf32, #tpu.memory_space<vmem>>, vector<1x2x128xf32>
    %1 = vector.shape_cast %0 : vector<1x2x128xf32> to vector<2x128xf32>
    %c1 = arith.constant 1 : index
    %c0_2 = arith.constant 0 : index
    %c0_3 = arith.constant 0 : index
    %2 = vector.load %arg1[%c1, %c0_2, %c0_3] : memref<8x2x128xf32, #tpu.memory_space<vmem>>, vector<1x2x128xf32>
    %3 = vector.shape_cast %2 : vector<1x2x128xf32> to vector<2x128xf32>
    %c2 = arith.constant 2 : index
    %c0_4 = arith.constant 0 : index
    %c0_5 = arith.constant 0 : index
    %4 = vector.load %arg1[%c2, %c0_4, %c0_5] : memref<8x2x128xf32, #tpu.memory_space<vmem>>, vector<1x2x128xf32>
    %5 = vector.shape_cast %4 : vector<1x2x128xf32> to vector<2x128xf32>
    %c3 = arith.constant 3 : index
    %c0_6 = arith.constant 0 : index
    %c0_7 = arith.constant 0 : index
    %6 = vector.load %arg1[%c3, %c0_6, %c0_7] : memref<8x2x128xf32, #tpu.memory_space<vmem>>, vector<1x2x128xf32>
    %7 = vector.shape_cast %6 : vector<1x2x128xf32> to vector<2x128xf32>
    %c0_8 = arith.constant 0 : index
    %c0_9 = arith.constant 0 : index
    %8 = memref.load %arg2[%c0_8, %c0_9] : memref<4x4xf32, #tpu.memory_space<smem>>
    %9 = vector.broadcast %8 : f32 to vector<2x128xf32>
    %10 = arith.mulf %9, %1 : vector<2x128xf32>
    %c1_10 = arith.constant 1 : index
    %c0_11 = arith.constant 0 : index
    %11 = memref.load %arg2[%c1_10, %c0_11] : memref<4x4xf32, #tpu.memory_space<smem>>
    %12 = vector.broadcast %11 : f32 to vector<2x128xf32>
    %13 = arith.mulf %12, %3 : vector<2x128xf32>
    %14 = arith.addf %10, %13 : vector<2x128xf32>
    %c2_12 = arith.constant 2 : index
    %c0_13 = arith.constant 0 : index
    %15 = memref.load %arg2[%c2_12, %c0_13] : memref<4x4xf32, #tpu.memory_space<smem>>
    %16 = vector.broadcast %15 : f32 to vector<2x128xf32>
    %17 = arith.mulf %16, %5 : vector<2x128xf32>
    %18 = arith.addf %14, %17 : vector<2x128xf32>
    %c3_14 = arith.constant 3 : index
    %c0_15 = arith.constant 0 : index
    %19 = memref.load %arg2[%c3_14, %c0_15] : memref<4x4xf32, #tpu.memory_space<smem>>
    %20 = vector.broadcast %19 : f32 to vector<2x128xf32>
    %21 = arith.mulf %20, %7 : vector<2x128xf32>
    %22 = arith.addf %18, %21 : vector<2x128xf32>
    %c0_16 = arith.constant 0 : index
    %23 = memref.load %arg3[%c0_16] : memref<4xf32, #tpu.memory_space<smem>>
    %24 = vector.broadcast %23 : f32 to vector<2x128xf32>
    %25 = arith.addf %22, %24 : vector<2x128xf32>
    %c0_17 = arith.constant 0 : index
    %c0_18 = arith.constant 0 : index
    %c0_19 = arith.constant 0 : index
    %26 = vector.load %arg4[%c0_17, %c0_18, %c0_19] : memref<8x2x128xf32, #tpu.memory_space<vmem>>, vector<1x2x128xf32>
    %27 = vector.shape_cast %26 : vector<1x2x128xf32> to vector<2x128xf32>
    %28 = vector.shape_cast %25 : vector<2x128xf32> to vector<1x2x128xf32>
    tpu.vector_store %arg4[%c0_17, %c0_18, %c0_19], %28 {strides = array<i32>} : memref<8x2x128xf32, #tpu.memory_space<vmem>>, vector<1x2x128xf32>,
    %c0_20 = arith.constant 0 : index
    %c1_21 = arith.constant 1 : index
    %29 = memref.load %arg2[%c0_20, %c1_21] : memref<4x4xf32, #tpu.memory_space<smem>>
    %30 = vector.broadcast %29 : f32 to vector<2x128xf32>
    %31 = arith.mulf %30, %1 : vector<2x128xf32>
    %c1_22 = arith.constant 1 : index
    %c1_23 = arith.constant 1 : index
    %32 = memref.load %arg2[%c1_22, %c1_23] : memref<4x4xf32, #tpu.memory_space<smem>>
    %33 = vector.broadcast %32 : f32 to vector<2x128xf32>
    %34 = arith.mulf %33, %3 : vector<2x128xf32>
    %35 = arith.addf %31, %34 : vector<2x128xf32>
    %c2_24 = arith.constant 2 : index
    %c1_25 = arith.constant 1 : index
    %36 = memref.load %arg2[%c2_24, %c1_25] : memref<4x4xf32, #tpu.memory_space<smem>>
    %37 = vector.broadcast %36 : f32 to vector<2x128xf32>
    %38 = arith.mulf %37, %5 : vector<2x128xf32>
    %39 = arith.addf %35, %38 : vector<2x128xf32>
    %c3_26 = arith.constant 3 : index
    %c1_27 = arith.constant 1 : index
    %40 = memref.load %arg2[%c3_26, %c1_27] : memref<4x4xf32, #tpu.memory_space<smem>>
    %41 = vector.broadcast %40 : f32 to vector<2x128xf32>
    %42 = arith.mulf %41, %7 : vector<2x128xf32>
    %43 = arith.addf %39, %42 : vector<2x128xf32>
    %c1_28 = arith.constant 1 : index
    %44 = memref.load %arg3[%c1_28] : memref<4xf32, #tpu.memory_space<smem>>
    %45 = vector.broadcast %44 : f32 to vector<2x128xf32>
    %46 = arith.addf %43, %45 : vector<2x128xf32>
    %c1_29 = arith.constant 1 : index
    %c0_30 = arith.constant 0 : index
    %c0_31 = arith.constant 0 : index
    %47 = vector.load %arg4[%c1_29, %c0_30, %c0_31] : memref<8x2x128xf32, #tpu.memory_space<vmem>>, vector<1x2x128xf32>
    %48 = vector.shape_cast %47 : vector<1x2x128xf32> to vector<2x128xf32>
    %49 = vector.shape_cast %46 : vector<2x128xf32> to vector<1x2x128xf32>
    tpu.vector_store %arg4[%c1_29, %c0_30, %c0_31], %49 {strides = array<i32>} : memref<8x2x128xf32, #tpu.memory_space<vmem>>, vector<1x2x128xf32>,
    %c0_32 = arith.constant 0 : index
    %c2_33 = arith.constant 2 : index
    %50 = memref.load %arg2[%c0_32, %c2_33] : memref<4x4xf32, #tpu.memory_space<smem>>
    %51 = vector.broadcast %50 : f32 to vector<2x128xf32>
    %52 = arith.mulf %51, %1 : vector<2x128xf32>
    %c1_34 = arith.constant 1 : index
    %c2_35 = arith.constant 2 : index
    %53 = memref.load %arg2[%c1_34, %c2_35] : memref<4x4xf32, #tpu.memory_space<smem>>
    %54 = vector.broadcast %53 : f32 to vector<2x128xf32>
    %55 = arith.mulf %54, %3 : vector<2x128xf32>
    %56 = arith.addf %52, %55 : vector<2x128xf32>
    %c2_36 = arith.constant 2 : index
    %c2_37 = arith.constant 2 : index
    %57 = memref.load %arg2[%c2_36, %c2_37] : memref<4x4xf32, #tpu.memory_space<smem>>
    %58 = vector.broadcast %57 : f32 to vector<2x128xf32>
    %59 = arith.mulf %58, %5 : vector<2x128xf32>
    %60 = arith.addf %56, %59 : vector<2x128xf32>
    %c3_38 = arith.constant 3 : index
    %c2_39 = arith.constant 2 : index
    %61 = memref.load %arg2[%c3_38, %c2_39] : memref<4x4xf32, #tpu.memory_space<smem>>
    %62 = vector.broadcast %61 : f32 to vector<2x128xf32>
    %63 = arith.mulf %62, %7 : vector<2x128xf32>
    %64 = arith.addf %60, %63 : vector<2x128xf32>
    %c2_40 = arith.constant 2 : index
    %65 = memref.load %arg3[%c2_40] : memref<4xf32, #tpu.memory_space<smem>>
    %66 = vector.broadcast %65 : f32 to vector<2x128xf32>
    %67 = arith.addf %64, %66 : vector<2x128xf32>
    %c2_41 = arith.constant 2 : index
    %c0_42 = arith.constant 0 : index
    %c0_43 = arith.constant 0 : index
    %68 = vector.load %arg4[%c2_41, %c0_42, %c0_43] : memref<8x2x128xf32, #tpu.memory_space<vmem>>, vector<1x2x128xf32>
    %69 = vector.shape_cast %68 : vector<1x2x128xf32> to vector<2x128xf32>
    %70 = vector.shape_cast %67 : vector<2x128xf32> to vector<1x2x128xf32>
    tpu.vector_store %arg4[%c2_41, %c0_42, %c0_43], %70 {strides = array<i32>} : memref<8x2x128xf32, #tpu.memory_space<vmem>>, vector<1x2x128xf32>,
    %c0_44 = arith.constant 0 : index
    %c3_45 = arith.constant 3 : index
    %71 = memref.load %arg2[%c0_44, %c3_45] : memref<4x4xf32, #tpu.memory_space<smem>>
    %72 = vector.broadcast %71 : f32 to vector<2x128xf32>
    %73 = arith.mulf %72, %1 : vector<2x128xf32>
    %c1_46 = arith.constant 1 : index
    %c3_47 = arith.constant 3 : index
    %74 = memref.load %arg2[%c1_46, %c3_47] : memref<4x4xf32, #tpu.memory_space<smem>>
    %75 = vector.broadcast %74 : f32 to vector<2x128xf32>
    %76 = arith.mulf %75, %3 : vector<2x128xf32>
    %77 = arith.addf %73, %76 : vector<2x128xf32>
    %c2_48 = arith.constant 2 : index
    %c3_49 = arith.constant 3 : index
    %78 = memref.load %arg2[%c2_48, %c3_49] : memref<4x4xf32, #tpu.memory_space<smem>>
    %79 = vector.broadcast %78 : f32 to vector<2x128xf32>
    %80 = arith.mulf %79, %5 : vector<2x128xf32>
    %81 = arith.addf %77, %80 : vector<2x128xf32>
    %c3_50 = arith.constant 3 : index
    %c3_51 = arith.constant 3 : index
    %82 = memref.load %arg2[%c3_50, %c3_51] : memref<4x4xf32, #tpu.memory_space<smem>>
    %83 = vector.broadcast %82 : f32 to vector<2x128xf32>
    %84 = arith.mulf %83, %7 : vector<2x128xf32>
    %85 = arith.addf %81, %84 : vector<2x128xf32>
    %c3_52 = arith.constant 3 : index
    %86 = memref.load %arg3[%c3_52] : memref<4xf32, #tpu.memory_space<smem>>
    %87 = vector.broadcast %86 : f32 to vector<2x128xf32>
    %88 = arith.addf %85, %87 : vector<2x128xf32>
    %c3_53 = arith.constant 3 : index
    %c0_54 = arith.constant 0 : index
    %c0_55 = arith.constant 0 : index
    %89 = vector.load %arg4[%c3_53, %c0_54, %c0_55] : memref<8x2x128xf32, #tpu.memory_space<vmem>>, vector<1x2x128xf32>
    %90 = vector.shape_cast %89 : vector<1x2x128xf32> to vector<2x128xf32>
    %91 = vector.shape_cast %88 : vector<2x128xf32> to vector<1x2x128xf32>
    tpu.vector_store %arg4[%c3_53, %c0_54, %c0_55], %91 {strides = array<i32>} : memref<8x2x128xf32, #tpu.memory_space<vmem>>, vector<1x2x128xf32>,
    %c4 = arith.constant 4 : index
    %c0_56 = arith.constant 0 : index
    %c0_57 = arith.constant 0 : index
    %92 = vector.load %arg1[%c4, %c0_56, %c0_57] : memref<8x2x128xf32, #tpu.memory_space<vmem>>, vector<1x2x128xf32>
    %93 = vector.shape_cast %92 : vector<1x2x128xf32> to vector<2x128xf32>
    %c5 = arith.constant 5 : index
    %c0_58 = arith.constant 0 : index
    %c0_59 = arith.constant 0 : index
    %94 = vector.load %arg1[%c5, %c0_58, %c0_59] : memref<8x2x128xf32, #tpu.memory_space<vmem>>, vector<1x2x128xf32>
    %95 = vector.shape_cast %94 : vector<1x2x128xf32> to vector<2x128xf32>
    %c6 = arith.constant 6 : index
    %c0_60 = arith.constant 0 : index
    %c0_61 = arith.constant 0 : index
    %96 = vector.load %arg1[%c6, %c0_60, %c0_61] : memref<8x2x128xf32, #tpu.memory_space<vmem>>, vector<1x2x128xf32>
    %97 = vector.shape_cast %96 : vector<1x2x128xf32> to vector<2x128xf32>
    %c7 = arith.constant 7 : index
    %c0_62 = arith.constant 0 : index
    %c0_63 = arith.constant 0 : index
    %98 = vector.load %arg1[%c7, %c0_62, %c0_63] : memref<8x2x128xf32, #tpu.memory_space<vmem>>, vector<1x2x128xf32>
    %99 = vector.shape_cast %98 : vector<1x2x128xf32> to vector<2x128xf32>
    %c0_64 = arith.constant 0 : index
    %c0_65 = arith.constant 0 : index
    %100 = memref.load %arg2[%c0_64, %c0_65] : memref<4x4xf32, #tpu.memory_space<smem>>
    %101 = vector.broadcast %100 : f32 to vector<2x128xf32>
    %102 = arith.mulf %101, %93 : vector<2x128xf32>
    %c1_66 = arith.constant 1 : index
    %c0_67 = arith.constant 0 : index
    %103 = memref.load %arg2[%c1_66, %c0_67] : memref<4x4xf32, #tpu.memory_space<smem>>
    %104 = vector.broadcast %103 : f32 to vector<2x128xf32>
    %105 = arith.mulf %104, %95 : vector<2x128xf32>
    %106 = arith.addf %102, %105 : vector<2x128xf32>
    %c2_68 = arith.constant 2 : index
    %c0_69 = arith.constant 0 : index
    %107 = memref.load %arg2[%c2_68, %c0_69] : memref<4x4xf32, #tpu.memory_space<smem>>
    %108 = vector.broadcast %107 : f32 to vector<2x128xf32>
    %109 = arith.mulf %108, %97 : vector<2x128xf32>
    %110 = arith.addf %106, %109 : vector<2x128xf32>
    %c3_70 = arith.constant 3 : index
    %c0_71 = arith.constant 0 : index
    %111 = memref.load %arg2[%c3_70, %c0_71] : memref<4x4xf32, #tpu.memory_space<smem>>
    %112 = vector.broadcast %111 : f32 to vector<2x128xf32>
    %113 = arith.mulf %112, %99 : vector<2x128xf32>
    %114 = arith.addf %110, %113 : vector<2x128xf32>
    %c0_72 = arith.constant 0 : index
    %115 = memref.load %arg3[%c0_72] : memref<4xf32, #tpu.memory_space<smem>>
    %116 = vector.broadcast %115 : f32 to vector<2x128xf32>
    %117 = arith.addf %114, %116 : vector<2x128xf32>
    %c4_73 = arith.constant 4 : index
    %c0_74 = arith.constant 0 : index
    %c0_75 = arith.constant 0 : index
    %118 = vector.load %arg4[%c4_73, %c0_74, %c0_75] : memref<8x2x128xf32, #tpu.memory_space<vmem>>, vector<1x2x128xf32>
    %119 = vector.shape_cast %118 : vector<1x2x128xf32> to vector<2x128xf32>
    %120 = vector.shape_cast %117 : vector<2x128xf32> to vector<1x2x128xf32>
    tpu.vector_store %arg4[%c4_73, %c0_74, %c0_75], %120 {strides = array<i32>} : memref<8x2x128xf32, #tpu.memory_space<vmem>>, vector<1x2x128xf32>,
    %c0_76 = arith.constant 0 : index
    %c1_77 = arith.constant 1 : index
    %121 = memref.load %arg2[%c0_76, %c1_77] : memref<4x4xf32, #tpu.memory_space<smem>>
    %122 = vector.broadcast %121 : f32 to vector<2x128xf32>
    %123 = arith.mulf %122, %93 : vector<2x128xf32>
    %c1_78 = arith.constant 1 : index
    %c1_79 = arith.constant 1 : index
    %124 = memref.load %arg2[%c1_78, %c1_79] : memref<4x4xf32, #tpu.memory_space<smem>>
    %125 = vector.broadcast %124 : f32 to vector<2x128xf32>
    %126 = arith.mulf %125, %95 : vector<2x128xf32>
    %127 = arith.addf %123, %126 : vector<2x128xf32>
    %c2_80 = arith.constant 2 : index
    %c1_81 = arith.constant 1 : index
    %128 = memref.load %arg2[%c2_80, %c1_81] : memref<4x4xf32, #tpu.memory_space<smem>>
    %129 = vector.broadcast %128 : f32 to vector<2x128xf32>
    %130 = arith.mulf %129, %97 : vector<2x128xf32>
    %131 = arith.addf %127, %130 : vector<2x128xf32>
    %c3_82 = arith.constant 3 : index
    %c1_83 = arith.constant 1 : index
    %132 = memref.load %arg2[%c3_82, %c1_83] : memref<4x4xf32, #tpu.memory_space<smem>>
    %133 = vector.broadcast %132 : f32 to vector<2x128xf32>
    %134 = arith.mulf %133, %99 : vector<2x128xf32>
    %135 = arith.addf %131, %134 : vector<2x128xf32>
    %c1_84 = arith.constant 1 : index
    %136 = memref.load %arg3[%c1_84] : memref<4xf32, #tpu.memory_space<smem>>
    %137 = vector.broadcast %136 : f32 to vector<2x128xf32>
    %138 = arith.addf %135, %137 : vector<2x128xf32>
    %c5_85 = arith.constant 5 : index
    %c0_86 = arith.constant 0 : index
    %c0_87 = arith.constant 0 : index
    %139 = vector.load %arg4[%c5_85, %c0_86, %c0_87] : memref<8x2x128xf32, #tpu.memory_space<vmem>>, vector<1x2x128xf32>
    %140 = vector.shape_cast %139 : vector<1x2x128xf32> to vector<2x128xf32>
    %141 = vector.shape_cast %138 : vector<2x128xf32> to vector<1x2x128xf32>
    tpu.vector_store %arg4[%c5_85, %c0_86, %c0_87], %141 {strides = array<i32>} : memref<8x2x128xf32, #tpu.memory_space<vmem>>, vector<1x2x128xf32>,
    %c0_88 = arith.constant 0 : index
    %c2_89 = arith.constant 2 : index
    %142 = memref.load %arg2[%c0_88, %c2_89] : memref<4x4xf32, #tpu.memory_space<smem>>
    %143 = vector.broadcast %142 : f32 to vector<2x128xf32>
    %144 = arith.mulf %143, %93 : vector<2x128xf32>
    %c1_90 = arith.constant 1 : index
    %c2_91 = arith.constant 2 : index
    %145 = memref.load %arg2[%c1_90, %c2_91] : memref<4x4xf32, #tpu.memory_space<smem>>
    %146 = vector.broadcast %145 : f32 to vector<2x128xf32>
    %147 = arith.mulf %146, %95 : vector<2x128xf32>
    %148 = arith.addf %144, %147 : vector<2x128xf32>
    %c2_92 = arith.constant 2 : index
    %c2_93 = arith.constant 2 : index
    %149 = memref.load %arg2[%c2_92, %c2_93] : memref<4x4xf32, #tpu.memory_space<smem>>
    %150 = vector.broadcast %149 : f32 to vector<2x128xf32>
    %151 = arith.mulf %150, %97 : vector<2x128xf32>
    %152 = arith.addf %148, %151 : vector<2x128xf32>
    %c3_94 = arith.constant 3 : index
    %c2_95 = arith.constant 2 : index
    %153 = memref.load %arg2[%c3_94, %c2_95] : memref<4x4xf32, #tpu.memory_space<smem>>
    %154 = vector.broadcast %153 : f32 to vector<2x128xf32>
    %155 = arith.mulf %154, %99 : vector<2x128xf32>
    %156 = arith.addf %152, %155 : vector<2x128xf32>
    %c2_96 = arith.constant 2 : index
    %157 = memref.load %arg3[%c2_96] : memref<4xf32, #tpu.memory_space<smem>>
    %158 = vector.broadcast %157 : f32 to vector<2x128xf32>
    %159 = arith.addf %156, %158 : vector<2x128xf32>
    %c6_97 = arith.constant 6 : index
    %c0_98 = arith.constant 0 : index
    %c0_99 = arith.constant 0 : index
    %160 = vector.load %arg4[%c6_97, %c0_98, %c0_99] : memref<8x2x128xf32, #tpu.memory_space<vmem>>, vector<1x2x128xf32>
    %161 = vector.shape_cast %160 : vector<1x2x128xf32> to vector<2x128xf32>
    %162 = vector.shape_cast %159 : vector<2x128xf32> to vector<1x2x128xf32>
    tpu.vector_store %arg4[%c6_97, %c0_98, %c0_99], %162 {strides = array<i32>} : memref<8x2x128xf32, #tpu.memory_space<vmem>>, vector<1x2x128xf32>,
    %c0_100 = arith.constant 0 : index
    %c3_101 = arith.constant 3 : index
    %163 = memref.load %arg2[%c0_100, %c3_101] : memref<4x4xf32, #tpu.memory_space<smem>>
    %164 = vector.broadcast %163 : f32 to vector<2x128xf32>
    %165 = arith.mulf %164, %93 : vector<2x128xf32>
    %c1_102 = arith.constant 1 : index
    %c3_103 = arith.constant 3 : index
    %166 = memref.load %arg2[%c1_102, %c3_103] : memref<4x4xf32, #tpu.memory_space<smem>>
    %167 = vector.broadcast %166 : f32 to vector<2x128xf32>
    %168 = arith.mulf %167, %95 : vector<2x128xf32>
    %169 = arith.addf %165, %168 : vector<2x128xf32>
    %c2_104 = arith.constant 2 : index
    %c3_105 = arith.constant 3 : index
    %170 = memref.load %arg2[%c2_104, %c3_105] : memref<4x4xf32, #tpu.memory_space<smem>>
    %171 = vector.broadcast %170 : f32 to vector<2x128xf32>
    %172 = arith.mulf %171, %97 : vector<2x128xf32>
    %173 = arith.addf %169, %172 : vector<2x128xf32>
    %c3_106 = arith.constant 3 : index
    %c3_107 = arith.constant 3 : index
    %174 = memref.load %arg2[%c3_106, %c3_107] : memref<4x4xf32, #tpu.memory_space<smem>>
    %175 = vector.broadcast %174 : f32 to vector<2x128xf32>
    %176 = arith.mulf %175, %99 : vector<2x128xf32>
    %177 = arith.addf %173, %176 : vector<2x128xf32>
    %c3_108 = arith.constant 3 : index
    %178 = memref.load %arg3[%c3_108] : memref<4xf32, #tpu.memory_space<smem>>
    %179 = vector.broadcast %178 : f32 to vector<2x128xf32>
    %180 = arith.addf %177, %179 : vector<2x128xf32>
    %c7_109 = arith.constant 7 : index
    %c0_110 = arith.constant 0 : index
    %c0_111 = arith.constant 0 : index
    %181 = vector.load %arg4[%c7_109, %c0_110, %c0_111] : memref<8x2x128xf32, #tpu.memory_space<vmem>>, vector<1x2x128xf32>
    %182 = vector.shape_cast %181 : vector<1x2x128xf32> to vector<2x128xf32>
    %183 = vector.shape_cast %180 : vector<2x128xf32> to vector<1x2x128xf32>
    tpu.vector_store %arg4[%c7_109, %c0_110, %c0_111], %183 {strides = array<i32>} : memref<8x2x128xf32, #tpu.memory_space<vmem>>, vector<1x2x128xf32>,
    return
  }
  func.func @transform_0(%arg0: i32) -> (i32, i32, i32) {
    %c0_i32 = arith.constant 0 : i32
    %c0_i32_0 = arith.constant 0 : i32
    %c0_i32_1 = arith.constant 0 : i32
    return %c0_i32, %arg0, %c0_i32_0 : i32, i32, i32
  }
  func.func @transform_1(%arg0: i32) -> (i32, i32) {
    %c0_i32 = arith.constant 0 : i32
    %c0_i32_0 = arith.constant 0 : i32
    %c0_i32_1 = arith.constant 0 : i32
    return %c0_i32, %c0_i32_0 : i32, i32
  }
  func.func @transform_2(%arg0: i32) -> i32 {
    %c0_i32 = arith.constant 0 : i32
    %c0_i32_0 = arith.constant 0 : i32
    return %c0_i32 : i32
  }
  func.func @transform_3(%arg0: i32) -> (i32, i32, i32) {
    %c0_i32 = arith.constant 0 : i32
    %c0_i32_0 = arith.constant 0 : i32
    %c0_i32_1 = arith.constant 0 : i32
    return %c0_i32, %arg0, %c0_i32_0 : i32, i32, i32
  }
}

</mosaic_0001>

<bundles_post_ra>
// kernel: tpu_custom_call.1
= control target key start
LH: loop header
LB: loop body
LE: loop exit
PB: predicated region body
PF: predicated region fallthrough
CT: control target
= control target key end

     0   :  { %8 = vsyncpa [#allocation3], 0  ;;  %s516_s0 = inlined_call_operand.hbm [shape: f32[8,2,128], index: 0, kind: input, shape index: {}]   ;;  %s517_s1 = inlined_call_operand.hbm [shape: f32[4,4], index: 1, kind: input, shape index: {}]   ;;  %s518_s2 = inlined_call_operand.vmem [shape: f32[4], index: 2, kind: input, shape index: {}]   ;;  %s519_s3 = inlined_call_operand.hbm [shape: f32[8,2,128], index: 3, kind: output, shape index: {}]  }
   0x1   :  { %9 = vsyncpa [#allocation5], 0 }
   0x2   :  { %10 = vsyncpa [#allocation6], 0 }
   0x3   :  { %11 = vsyncpa [#allocation4], 0  ;;  %s16_s14 = sshll.u32 %s516_s0, 4  ;;  %s373_s15 = smov [#allocation2]   ;;  %s17_s14 = int_to_ptr.hbm [resolvable:$true] %s16_s14 }
   0x4   :  { %s18_s16 = sshll.u32 %s373_s15, 4  ;;  %s30_s19 = sshll.u32 %s517_s1, 4  ;;  %s19_s16 = int_to_ptr.vmem [resolvable:$true] %s18_s16  ;;  %s31_s19 = int_to_ptr.hbm [resolvable:$true] %s30_s19 }
   0x5   :  { %s374_s20 = smov 32   ;;  %s375_s21 = smov 2  }
   0x6   :  { %24 = dma.hbm_to_vmem [thread:$0]  %s17_s14, 256, %s19_s16, [#allocation3], %s374_s20, %s374_s20, %s375_s21  }
   0x7   :  { %s376_s22 = smov [#allocation7]   ;;  %s39_s0 = sshll.u32 %s518_s2, 4  ;;  %s40_s0 = int_to_ptr.vmem [resolvable:$true] %s39_s0 }
   0x8   :  { %33 = dma.hbm_to_smem %s31_s19, 64, %s376_s22, [#allocation5]  }
   0x9   :  { %s377_s25 = smov [#allocation8]  }
   0xa   :  { %42 = dma.vmem_to_smem %s40_s0, 16, %s377_s25, [#allocation6]  }
   0xb   :  { %365 = dma.done.wait [#allocation3], 256  }
   0xc   :  { %366 = vsyncadd [#allocation3], 4294967040 }
   0xd   :  { %367 = dma.done.wait [#allocation5], 64  }
   0xe   :  { %368 = vsyncadd [#allocation5], 4294967232 }
   0xf   :  { %369 = dma.done.wait [#allocation6], 16  }
  0x10   :  { %370 = vsyncadd [#allocation6], 4294967280 }
  0x11   :  { %55 = sfence }
  0x12   :  { %s63_s1 = sld [smem:[#allocation7]]  ;;  %v413_v0 = vld [vmem:[#allocation2] sm:$0x3]  ;;  %v417_v1 = vld [vmem:[#allocation2 + $0x8] sm:$0x3]  ;;  %s378_s17 = smov [#allocation9]  }
  0x13   :  { %s251_s26 = sld [smem:[#allocation7 + $0x80]]  ;;  %v419_v2 = vld [vmem:[#allocation2 + $0x2] sm:$0x3]  ;;  %v423_v3 = vld [vmem:[#allocation2 + $0xa] sm:$0x3]  ;;  %s234_s18 = sshll.u32 %s378_s17, 4  ;;  %s235_s18 = int_to_ptr.vmem [resolvable:$true] %s234_s18 }
  0x14   :  { %s252_s27 = sld [smem:[#allocation7 + $0x100]]  ;;  %v425_v4 = vld [vmem:[#allocation2 + $0x4] sm:$0x3]  ;;  %v429_v6 = vld [vmem:[#allocation2 + $0xc] sm:$0x3]  ;;  %s236_s23 = sshll.u32 %s519_s3, 4  ;;  %s237_s23 = int_to_ptr.hbm [resolvable:$true] %s236_s23 }
  0x15   :  { %s411_s28 = sld [smem:[#allocation7 + $0x180]]  ;;  %v431_v7 = vld [vmem:[#allocation2 + $0x6] sm:$0x3]  ;;  %v440_v13 = vld [vmem:[#allocation2 + $0xe] sm:$0x3] }
  0x16   :  { %s415_s29 = sld [smem:[#allocation8]] }
  0x17   :  { %s421_s2 = sld [smem:[#allocation7 + $0x1]] }
  0x18   :  { %v64_v5 = vstv %s63_s1  ;;  %s427_s30 = sld [smem:[#allocation7 + $0x81]] }
  0x19   :  { %v65_v8 = vmul.f32 %v64_v5, %v413_v0  ;;  %v67_v9 = vstv %s251_s26  ;;  %s434_s4 = sld [smem:[#allocation7 + $0x101]]  ;;  %v152_v10 = vmul.f32 %v417_v1, %v64_v5 }
  0x1a   :  { %v68_v11 = vmul.f32 %v67_v9, %v419_v2  ;;  %v71_v12 = vstv %s252_s27  ;;  %s438_s5 = sld [smem:[#allocation7 + $0x181]]  ;;  %v155_v14 = vmul.f32 %v423_v3, %v67_v9 }
  0x1b   :  { %v72_v15 = vmul.f32 %v71_v12, %v425_v4  ;;  %v75_v16 = vstv %s411_s28  ;;  %s445_s6 = sld [smem:[#allocation8 + $0x1]]  ;;  %v159_v17 = vmul.f32 %v429_v6, %v71_v12 }
  0x1c   :  { %v69_v18 = vadd.f32 %v68_v11, %v65_v8  ;;  %v76_v19 = vmul.f32 %v75_v16, %v431_v7  ;;  %s449_s7 = sld [smem:[#allocation7 + $0x2]]  ;;  %v156_v20 = vadd.f32 %v155_v14, %v152_v10  ;;  %v79_v21 = vstv %s415_s29 }
  0x1d   :  { %v83_v22 = vstv %s421_s2  ;;  %s453_s8 = sld [smem:[#allocation7 + $0x82]]  ;;  %v163_v23 = vmul.f32 %v440_v13, %v75_v16 }
  0x1e   :  { %v73_v24 = vadd.f32 %v72_v15, %v69_v18  ;;  %v84_v25 = vmul.f32 %v83_v22, %v413_v0  ;;  %v86_v26 = vstv %s427_s30  ;;  %s458_s9 = sld [smem:[#allocation7 + $0x102]]  ;;  %v160_v27 = vadd.f32 %v159_v17, %v156_v20 }
  0x1f   :  { %v87_v28 = vmul.f32 %v86_v26, %v419_v2  ;;  %v90_v29 = vstv %s434_s4  ;;  %s462_s10 = sld [smem:[#allocation7 + $0x182]]  ;;  %v172_v30 = vmul.f32 %v417_v1, %v83_v22  ;;  %v175_v31 = vmul.f32 %v423_v3, %v86_v26 }
  0x20   :  { %v77_v32 = vadd.f32 %v76_v19, %v73_v24  ;;  %v91_v33 = vmul.f32 %v90_v29, %v425_v4  ;;  %v94_v34 = vstv %s438_s5  ;;  %s468_s11 = sld [smem:[#allocation8 + $0x2]]  ;;  %v164_v35 = vadd.f32 %v163_v23, %v160_v27 }
  0x21   :  { %v88_v36 = vadd.f32 %v87_v28, %v84_v25  ;;  %v95_v37 = vmul.f32 %v94_v34, %v431_v7  ;;  %v98_v38 = vstv %s445_s6  ;;  %s472_s12 = sld [smem:[#allocation7 + $0x3]]  ;;  %v176_v39 = vadd.f32 %v175_v31, %v172_v30 }
  0x22   :  { %v80_v40 = vadd.f32 %v79_v21, %v77_v32  ;;  %v103_v41 = vstv %s449_s7  ;;  %s475_s13 = sld [smem:[#allocation7 + $0x83]]  ;;  %v167_v42 = vadd.f32 %v164_v35, %v79_v21  ;;  %v179_v43 = vmul.f32 %v429_v6, %v90_v29 }
  0x23   :  { %v92_v44 = vadd.f32 %v91_v33, %v88_v36  ;;  %v104_v45 = vmul.f32 %v103_v41, %v413_v0  ;;  %v106_v46 = vstv %s453_s8  ;;  %s480_s14 = sld [smem:[#allocation7 + $0x103]]  ;;  %v183_v47 = vmul.f32 %v440_v13, %v94_v34 }
  0x24   :  { %81 = vst [vmem:[#allocation9] sm:$0x3] %v80_v40  ;;  %v107_v48 = vmul.f32 %v106_v46, %v419_v2  ;;  %v110_v49 = vstv %s458_s9  ;;  %s485_s15 = sld [smem:[#allocation7 + $0x183]]  ;;  %v180_v50 = vadd.f32 %v179_v43, %v176_v39  ;;  %v192_v51 = vmul.f32 %v417_v1, %v103_v41 }
  0x25   :  { %v96_v52 = vadd.f32 %v95_v37, %v92_v44  ;;  %v111_v53 = vmul.f32 %v110_v49, %v425_v4  ;;  %v114_v54 = vstv %s462_s10  ;;  %169 = vst [vmem:[#allocation9 + $0x8] sm:$0x3] %v167_v42  ;;  %v195_v55 = vmul.f32 %v423_v3, %v106_v46  ;;  %s493_s16 = sld [smem:[#allocation8 + $0x3]] }
  0x26   :  { %v108_v56 = vadd.f32 %v107_v48, %v104_v45  ;;  %v115_v57 = vmul.f32 %v114_v54, %v431_v7  ;;  %v118_v58 = vstv %s468_s11  ;;  %v184_v59 = vadd.f32 %v183_v47, %v180_v50 }
  0x27   :  { %v99_v60 = vadd.f32 %v98_v38, %v96_v52  ;;  %v123_v61 = vstv %s472_s12  ;;  %v196_v62 = vadd.f32 %v195_v55, %v192_v51  ;;  %v199_v63 = vmul.f32 %v429_v6, %v110_v49 }
  0x28   :  { %v112_v5 = vadd.f32 %v111_v53, %v108_v56  ;;  %v124_v8 = vmul.f32 %v123_v61, %v413_v0  ;;  %v126_v9 = vstv %s475_s13  ;;  %v187_v10 = vadd.f32 %v184_v59, %v98_v38 }
  0x29   :  { %101 = vst [vmem:[#allocation9 + $0x2] sm:$0x3] %v99_v60  ;;  %v127_v11 = vmul.f32 %v126_v9, %v419_v2  ;;  %v130_v12 = vstv %s480_s14  ;;  %v200_v14 = vadd.f32 %v199_v63, %v196_v62  ;;  %v203_v15 = vmul.f32 %v440_v13, %v114_v54 }
  0x2a   :  { %v116_v16 = vadd.f32 %v115_v57, %v112_v5  ;;  %v131_v17 = vmul.f32 %v130_v12, %v425_v4  ;;  %v134_v18 = vstv %s485_s15  ;;  %189 = vst [vmem:[#allocation9 + $0xa] sm:$0x3] %v187_v10  ;;  %v212_v19 = vmul.f32 %v417_v1, %v123_v61 }
  0x2b   :  { %v128_v20 = vadd.f32 %v127_v11, %v124_v8  ;;  %v135_v0 = vmul.f32 %v134_v18, %v431_v7  ;;  %v204_v21 = vadd.f32 %v203_v15, %v200_v14  ;;  %v215_v23 = vmul.f32 %v423_v3, %v126_v9 }
  0x2c   :  { %v119_v22 = vadd.f32 %v118_v58, %v116_v16  ;;  %v219_v2 = vmul.f32 %v429_v6, %v130_v12  ;;  %v138_v26 = vstv %s493_s16  ;;  %v223_v4 = vmul.f32 %v440_v13, %v134_v18 }
  0x2d   :  { %v132_v24 = vadd.f32 %v131_v17, %v128_v20  ;;  %v207_v25 = vadd.f32 %v204_v21, %v118_v58  ;;  %v216_v27 = vadd.f32 %v215_v23, %v212_v19 }
  0x2e   :  { %121 = vst [vmem:[#allocation9 + $0x4] sm:$0x3] %v119_v22 }
  0x2f   :  { %v136_v28 = vadd.f32 %v135_v0, %v132_v24  ;;  %209 = vst [vmem:[#allocation9 + $0xc] sm:$0x3] %v207_v25  ;;  %v220_v29 = vadd.f32 %v219_v2, %v216_v27 }
  0x31   :  { %v139_v1 = vadd.f32 %v138_v26, %v136_v28  ;;  %v224_v3 = vadd.f32 %v223_v4, %v220_v29 }
  0x33   :  { %141 = vst [vmem:[#allocation9 + $0x6] sm:$0x3] %v139_v1  ;;  %v227_v6 = vadd.f32 %v224_v3, %v138_v26 }
  0x35   :  { %229 = vst [vmem:[#allocation9 + $0xe] sm:$0x3] %v227_v6 }
  0x36   :  { %242 = dma.vmem_to_hbm [thread:$0]  %s235_s18, 256, %s237_s23, [#allocation4], %s374_s20, %s374_s20, %s375_s21  }
  0x37   :  { %371 = dma.done.wait [#allocation4], 256  }
  0x38   :  { %372 = vsyncadd [#allocation4], 4294967040 }
  0x39   :  { %247 = vsyncpa [#allocation3], 1 }
  0x3a   :  { %248 = vsyncpa [#allocation4], 1 }
  0x3b   :  { %249 = vsyncpa [#allocation5], 1 }
  0x3c   :  { %250 = vsyncpa [#allocation6], 1 }

</bundles_post_ra>
